<compile_context>
chip_gen: v7x
topology: tpu7x:2x2x1
jax: 0.10.0
libtpu: 0.0.40
codegen_flags: <defaults>
</compile_context>

<pallas_src>
import jax
import jax.numpy as jnp
from jax import lax
from jax.experimental import pallas as pl
from jax.experimental.pallas import tpu as pltpu

_LANES = 128                     # lane width of the slab / blocks
_SUBLANES = 8                    # f32 sublane packing
_SMALL_FALLBACK_NUMEL = 1 << 20  # below this, plain fused jnp is strictly faster


def _round_up(x, m):
    return ((x + m - 1) // m) * m


def _cdiv(a, b):
    return -(-a // b)


def _chip_config():
    """(tensorcores_per_chip, per-input block bytes) tuned per TPU generation."""
    tc, blk = 1, 4 << 20          # v5e / v6e: 1 TC, 4 MiB per-input blocks
    try:
        kind = str(jax.devices()[0].device_kind).lower()
        if "v7" in kind or "7x" in kind:
            # v7x: 2 TCs, 8 MiB blocks -> 32 MiB double-buffered footprint,
            # fits the 64 MiB VMEM with headroom.
            tc, blk = 2, 8 << 20
    except Exception:
        pass
    return tc, blk


def _make_mse_sum_kernel(rows, block_rows, steps_per_shard, needs_mask):
    def kernel(a_ref, b_ref, o_ref):
        s = pl.program_id(0)   # parallel shard
        i = pl.program_id(1)   # reduction step within shard

        @pl.when(i == 0)
        def _():
            o_ref[...] = jnp.zeros_like(o_ref)

        d = a_ref[...].astype(jnp.float32) - b_ref[...].astype(jnp.float32)
        sq = d * d

        def accumulate(x):
            # VPU-only partial reduction onto the resident (1, 8, 128) output
            # block (acts as a vreg accumulator across the reduction axis).
            o_ref[...] += jnp.sum(
                x.reshape(-1, _SUBLANES, _LANES), axis=0
            )[None]

        if needs_mask:
            # Only the ragged last block (and clamped dummy blocks of the
            # shard split) pay the iota/compare/select cost; full blocks take
            # the cheap path so the kernel stays DMA-bound.
            row0 = (s * steps_per_shard + i) * block_rows
            is_edge = row0 + block_rows > rows

            @pl.when(is_edge)
            def _():
                gid = row0 + lax.broadcasted_iota(jnp.int32, sq.shape, 0)
                accumulate(jnp.where(gid < rows, sq, jnp.float32(0.0)))

            @pl.when(jnp.logical_not(is_edge))
            def _():
                accumulate(sq)
        else:
            accumulate(sq)

    return kernel


def _mse_sum_2d(a2, b2):
    """Sum((a2-b2)^2) over a lane-dense (rows, 128) slab via a Pallas kernel."""
    rows = a2.shape[0]
    itemsize = jnp.dtype(a2.dtype).itemsize
    num_cores, block_bytes = _chip_config()

    # Size blocks by bytes (keeps DMA/overhead ratio stable across dtypes);
    # 512-row granularity keeps sublane packing happy for f32/bf16/fp8.
    cap_rows = max(512, (block_bytes // (_LANES * itemsize)) // 512 * 512)
    if rows >= cap_rows:
        block_rows = cap_rows
    else:
        block_rows = _round_up(rows, _SUBLANES)

    grid0 = _cdiv(rows, block_rows)                   # total row-blocks
    num_shards = num_cores if grid0 >= num_cores else 1
    steps = _cdiv(grid0, num_shards)                  # reduction steps / shard
    needs_mask = (num_shards * steps * block_rows) != rows

    def in_index_map(s, i):
        # Clamp logical block indices past the end (ragged shard split) onto
        # the last valid block; their rows are masked to zero in the kernel.
        return (jnp.minimum(s * steps + i, grid0 - 1), 0)

    kernel = _make_mse_sum_kernel(rows, block_rows, steps, needs_mask)
    vmem_limit = max(32 << 20, 4 * block_bytes + (8 << 20))

    partial = pl.pallas_call(
        kernel,
        out_shape=jax.ShapeDtypeStruct((num_shards, _SUBLANES, _LANES),
                                       jnp.float32),
        grid_spec=pltpu.PrefetchScalarGridSpec(
            num_scalar_prefetch=0,
            grid=(num_shards, steps),
            in_specs=[
                pl.BlockSpec((block_rows, _LANES), in_index_map),
                pl.BlockSpec((block_rows, _LANES), in_index_map),
            ],
            out_specs=pl.BlockSpec((1, _SUBLANES, _LANES),
                                   lambda s, i: (s, 0, 0)),
        ),
        compiler_params=pltpu.CompilerParams(
            dimension_semantics=("parallel", "arbitrary"),
            vmem_limit_bytes=vmem_limit,
        ),
    )(a2, b2)
    # Sum the tiny (shards, 8, 128) partial accumulator on the host side.
    return jnp.sum(partial)


def latent_loss(z_, z, *, min_pallas_numel=_SMALL_FALLBACK_NUMEL):
    """Sum-reduction MSE between z_ and z (torch nn.MSELoss(reduction='sum'))."""
    assert z_.shape == z.shape, "LatentLoss expects matching shapes"

    a = jnp.ravel(z_)
    b = jnp.ravel(z)
    n = a.shape[0]
    if n == 0:
        return jnp.float32(0.0)

    # Small inputs (pallas launch overhead dominates) and non-lane-multiple
    # inputs (where the slab view would require an HBM copy) use one fused
    # XLA pass: single read of each input, no slice/pad copy.
    if n < min_pallas_numel or (n % _LANES) != 0:
        d = a.astype(jnp.float32) - b.astype(jnp.float32)
        return jnp.sum(d * d)

    rows = n // _LANES
    return _mse_sum_2d(a.reshape(rows, _LANES), b.reshape(rows, _LANES))


if __name__ == "__main__":
    key = jax.random.PRNGKey(0)
    k1, k2, k3, k4 = jax.random.split(key, 4)

    def ref_loss(x, y):
        d = x.astype(jnp.float32) - y.astype(jnp.float32)
        return jnp.sum(d * d)

    # 1) Small latent-like tensors (the module's typical use): fused jnp path.
    z_pred = jax.random.normal(k1, (2, 4, 16, 16), dtype=jnp.float32)
    z_tgt = jax.random.normal(k2, (2, 4, 16, 16), dtype=jnp.float32)
    loss_small = jax.block_until_ready(latent_loss(z_pred, z_tgt))
    assert jnp.allclose(loss_small, ref_loss(z_pred, z_tgt),
                        rtol=1e-5, atol=1e-5), "small (fallback) mismatch"

    # 2) Same small input forced through the Pallas kernel (single tiny block).
    loss_small_k = jax.block_until_ready(
        latent_loss(z_pred, z_tgt, min_pallas_numel=0))
    assert jnp.allclose(loss_small_k, ref_loss(z_pred, z_tgt),
                        rtol=1e-5, atol=1e-5), "small (kernel) mismatch"

    # 3) Larger input exercising the multi-block pipelined kernel with a
    #    ragged final block (and the shard split on multi-TC chips).
    big_pred = jax.random.normal(k3, (8, 4, 400, 410), dtype=jnp.float32)
    big_tgt = jax.random.normal(k4, (8, 4, 400, 410), dtype=jnp.float32)
    loss_big = jax.block_until_ready(latent_loss(big_pred, big_tgt))
    ref_big = ref_loss(big_pred, big_tgt)
    assert jnp.allclose(loss_big, ref_big, rtol=1e-5, atol=1e-2), \
        (loss_big, ref_big)

    # 4) Non lane-multiple element count: fused jnp path (no slice/pad copy).
    odd_pred = jax.random.normal(k1, (3, 5, 7, 11), dtype=jnp.float32)
    odd_tgt = jax.random.normal(k2, (3, 5, 7, 11), dtype=jnp.float32)
    loss_odd = jax.block_until_ready(latent_loss(odd_pred, odd_tgt))
    assert jnp.allclose(loss_odd, ref_loss(odd_pred, odd_tgt),
                        rtol=1e-5, atol=1e-5), "odd-numel mismatch"

    print("KERNEL_OK")
</pallas_src>

<mosaic_0001>
module attributes {stable_mosaic.version = 11 : i64} {
  func.func @kernel(%arg0: i32, %arg1: i32, %arg2: memref<16x128xf32, #tpu.memory_space<vmem>>, %arg3: memref<16x128xf32, #tpu.memory_space<vmem>>, %arg4: memref<1x8x128xf32, #tpu.memory_space<vmem>>) attributes {dimension_semantics = [#tpu.dimension_semantics<parallel>, #tpu.dimension_semantics<arbitrary>], iteration_bounds = array<i64: 1, 1>, scalar_prefetch = 0 : i64, scratch_operands = 0 : i64, tpu.core_type = #tpu.core_type<tc>, window_params = [{transform_indices = @transform_0, window_bounds = array<i64: 16, 128>}, {transform_indices = @transform_1, window_bounds = array<i64: 16, 128>}, {transform_indices = @transform_2, window_bounds = array<i64: 1, 8, 128>}]} {
    %c0_i32 = arith.constant 0 : i32
    %0 = arith.cmpi eq, %arg1, %c0_i32 : i32
    %1 = arith.extui %0 : i1 to i32
    %c0_i32_0 = arith.constant 0 : i32
    %2 = arith.cmpi ne, %1, %c0_i32_0 : i32
    scf.if %2 {
      %cst_10 = arith.constant 0.000000e+00 : f32
      %13 = vector.broadcast %cst_10 : f32 to vector<1x8x128xf32>
      %c0_11 = arith.constant 0 : index
      %c0_12 = arith.constant 0 : index
      %c0_13 = arith.constant 0 : index
      %14 = vector.load %arg4[%c0_11, %c0_12, %c0_13] : memref<1x8x128xf32, #tpu.memory_space<vmem>>, vector<1x8x128xf32>
      tpu.vector_store %arg4[%c0_11, %c0_12, %c0_13], %13 {strides = array<i32>} : memref<1x8x128xf32, #tpu.memory_space<vmem>>, vector<1x8x128xf32>,
    } else {
    }
    %c0 = arith.constant 0 : index
    %c0_1 = arith.constant 0 : index
    %3 = vector.load %arg2[%c0, %c0_1] : memref<16x128xf32, #tpu.memory_space<vmem>>, vector<16x128xf32>
    %c0_2 = arith.constant 0 : index
    %c0_3 = arith.constant 0 : index
    %4 = vector.load %arg3[%c0_2, %c0_3] : memref<16x128xf32, #tpu.memory_space<vmem>>, vector<16x128xf32>
    %5 = arith.subf %3, %4 : vector<16x128xf32>
    %6 = arith.mulf %5, %5 : vector<16x128xf32>
    %c0_4 = arith.constant 0 : index
    %c0_5 = arith.constant 0 : index
    %c0_6 = arith.constant 0 : index
    %7 = vector.load %arg4[%c0_4, %c0_5, %c0_6] : memref<1x8x128xf32, #tpu.memory_space<vmem>>, vector<1x8x128xf32>
    %8 = vector.shape_cast %6 : vector<16x128xf32> to vector<2x8x128xf32>
    %cst = arith.constant dense<0.000000e+00> : vector<8x128xf32>
    %9 = vector.multi_reduction <add>, %8, %cst [0] : vector<2x8x128xf32> to vector<8x128xf32>
    %10 = vector.shape_cast %9 : vector<8x128xf32> to vector<1x8x128xf32>
    %11 = arith.addf %7, %10 : vector<1x8x128xf32>
    %c0_7 = arith.constant 0 : index
    %c0_8 = arith.constant 0 : index
    %c0_9 = arith.constant 0 : index
    %12 = vector.load %arg4[%c0_7, %c0_8, %c0_9] : memref<1x8x128xf32, #tpu.memory_space<vmem>>, vector<1x8x128xf32>
    tpu.vector_store %arg4[%c0_7, %c0_8, %c0_9], %11 {strides = array<i32>} : memref<1x8x128xf32, #tpu.memory_space<vmem>>, vector<1x8x128xf32>,
    return
  }
  func.func @transform_0(%arg0: i32, %arg1: i32) -> (i32, i32) {
    %c1_i32 = arith.constant 1 : i32
    %0 = arith.muli %arg0, %c1_i32 : i32
    %1 = arith.addi %0, %arg1 : i32
    %c0_i32 = arith.constant 0 : i32
    %2 = arith.minsi %1, %c0_i32 : i32
    %c0_i32_0 = arith.constant 0 : i32
    %c0_i32_1 = arith.constant 0 : i32
    return %2, %c0_i32_0 : i32, i32
  }
  func.func @transform_1(%arg0: i32, %arg1: i32) -> (i32, i32) {
    %c1_i32 = arith.constant 1 : i32
    %0 = arith.muli %arg0, %c1_i32 : i32
    %1 = arith.addi %0, %arg1 : i32
    %c0_i32 = arith.constant 0 : i32
    %2 = arith.minsi %1, %c0_i32 : i32
    %c0_i32_0 = arith.constant 0 : i32
    %c0_i32_1 = arith.constant 0 : i32
    return %2, %c0_i32_0 : i32, i32
  }
  func.func @transform_2(%arg0: i32, %arg1: i32) -> (i32, i32, i32) {
    %c0_i32 = arith.constant 0 : i32
    %c0_i32_0 = arith.constant 0 : i32
    %c0_i32_1 = arith.constant 0 : i32
    return %arg0, %c0_i32, %c0_i32_0 : i32, i32, i32
  }
}

</mosaic_0001>

<bundles_post_ra>
// kernel: tpu_custom_call.1
= control target key start
LH: loop header
LB: loop body
LE: loop exit
PB: predicated region body
PF: predicated region fallthrough
CT: control target
= control target key end

     0   :  { %7 = vsyncpa [#allocation3], 0  ;;  %s231_s0 = inlined_call_operand.hbm [shape: f32[16,128], index: 0, kind: input, shape index: {}]   ;;  %s232_s1 = inlined_call_operand.hbm [shape: f32[16,128], index: 1, kind: input, shape index: {}]   ;;  %s233_s2 = inlined_call_operand.hbm [shape: f32[1,8,128], index: 2, kind: output, shape index: {}]  }
   0x1   :  { %8 = vsyncpa [#allocation6], 0 }
   0x2   :  { %9 = vsyncpa [#allocation4], 0  ;;  %s175_s9 = smov [#allocation2]   ;;  %s103_s13 = scalar_lea.hbm %s231_s0, 256 }
   0x3   :  { %s21_s10 = sshll.u32 %s175_s9, 4  ;;  %p104_p0 = scmp.ne.s32.totalorder %s231_s0, %s103_s13  ;;  %s22_s10 = int_to_ptr.vmem [resolvable:$true] %s21_s10 }
   0x4   :  { %p107_p1 = scmp.lt.u32.totalorder %s103_s13, %s231_s0 }
   0x6   :  { %p109_p2 = pnand %p107_p1, %p104_p0 }
   0x8   :  { %112 = shalt.err (!%p109_p2)
}
   0x9   :  { %s113_s18 = scalar_lea.vmem %s22_s10, 256  ;;  %p118_p4 = scmp.lt.s32.totalorder %s22_s10, %s22_s10 }
   0xa   :  { %p114_p3 = scmp.ne.s32.totalorder %s22_s10, %s113_s18  ;;  %p119_p5 = scmp.lt.s32.totalorder %s113_s18, %s113_s18 }
   0xc   :  { %p120_p6 = por %p119_p5, %p118_p4 }
   0xe   :  { %p121_p7 = pnand %p120_p6, %p114_p3 }
  0x10   :  { %124 = shalt.err (!%p121_p7)
}
  0x11   :  { %s176_s19 = smov 128   ;;  %s177_s20 = smov 8  }
  0x12   :  { %27 = dma.hbm_to_vmem [thread:$0]  %s231_s0, 256, %s22_s10, [#allocation3], %s176_s19, %s176_s19, %s177_s20  }
  0x13   :  { %s178_s23 = smov [#allocation5]   ;;  %s125_s27 = scalar_lea.hbm %s232_s1, 256 }
  0x14   :  { %s39_s24 = sshll.u32 %s178_s23, 4  ;;  %p126_p8 = scmp.ne.s32.totalorder %s232_s1, %s125_s27  ;;  %s40_s24 = int_to_ptr.vmem [resolvable:$true] %s39_s24 }
  0x15   :  { %p129_p9 = scmp.lt.u32.totalorder %s125_s27, %s232_s1 }
  0x17   :  { %p131_p10 = pnand %p129_p9, %p126_p8 }
  0x19   :  { %134 = shalt.err (!%p131_p10)
}
  0x1a   :  { %s135_s4 = scalar_lea.vmem %s40_s24, 256  ;;  %p140_p12 = scmp.lt.s32.totalorder %s40_s24, %s40_s24 }
  0x1b   :  { %p136_p11 = scmp.ne.s32.totalorder %s40_s24, %s135_s4  ;;  %p141_p13 = scmp.lt.s32.totalorder %s135_s4, %s135_s4 }
  0x1d   :  { %p142_p0 = por %p141_p13, %p140_p12 }
  0x1f   :  { %p143_p1 = pnand %p142_p0, %p136_p11 }
  0x21   :  { %146 = shalt.err (!%p143_p1)
}
  0x22   :  { %45 = dma.hbm_to_vmem [thread:$0]  %s232_s1, 256, %s40_s24, [#allocation6], %s176_s19, %s176_s19, %s177_s20  }
  0x23   :  { %169 = dma.done.wait [#allocation3], 256  }
  0x24   :  { %170 = vsyncadd [#allocation3], 4294967040 }
  0x25   :  { %171 = dma.done.wait [#allocation6], 256  }
  0x26   :  { %172 = vsyncadd [#allocation6], 4294967040  ;;  %v65_v0 = vld [vmem:[#allocation2] sm:$0xff]  ;;  %v66_v1 = vld [vmem:[#allocation2 + $0x8] sm:$0xff]  ;;  %s179_s6 = smov [#allocation7]  }
  0x27   :  { %v67_v2 = vld [vmem:[#allocation5] sm:$0xff]  ;;  %v68_v3 = vld [vmem:[#allocation5 + $0x8] sm:$0xff]  ;;  %s83_s7 = sshll.u32 %s179_s6, 4  ;;  %s84_s7 = int_to_ptr.vmem [resolvable:$true] %s83_s7 }
  0x28   :  { %v69_v4 = vsub.f32 %v65_v0, %v67_v2  ;;  %v70_v5 = vsub.f32 %v66_v1, %v68_v3  ;;  %s147_s8 = scalar_lea.vmem %s84_s7, 128  ;;  %p152_p3 = scmp.lt.s32.totalorder %s84_s7, %s84_s7 }
  0x29   :  { %p148_p2 = scmp.ne.s32.totalorder %s84_s7, %s147_s8  ;;  %p153_p4 = scmp.lt.s32.totalorder %s147_s8, %s147_s8 }
  0x2a   :  { %v71_v6 = vmul.f32 %v69_v4, %v69_v4  ;;  %v72_v7 = vmul.f32 %v70_v5, %v70_v5 }
  0x2b   :  { %p154_p5 = por %p153_p4, %p152_p3 }
  0x2c   :  { %v74_v8 = vadd.f32 %v72_v7, %v71_v6 }
  0x2d   :  { %p155_p6 = pnand %p154_p5, %p148_p2 }
  0x2e   :  { %76 = vst [vmem:[#allocation7] sm:$0xff] %v74_v8 }
  0x2f   :  { %158 = shalt.err (!%p155_p6)
}
  0x30   :  { %s159_s10 = scalar_lea.hbm %s233_s2, 128 }
  0x31   :  { %p160_p7 = scmp.ne.s32.totalorder %s233_s2, %s159_s10  ;;  %p163_p8 = scmp.lt.u32.totalorder %s159_s10, %s233_s2 }
  0x33   :  { %p165_p9 = pnand %p163_p8, %p160_p7 }
  0x35   :  { %168 = shalt.err (!%p165_p9)
}
  0x36   :  { %86 = dma.vmem_to_hbm [thread:$0]  %s84_s7, 128, %s233_s2, [#allocation4]  }
  0x37   :  { %173 = dma.done.wait [#allocation4], 128  }
  0x38   :  { %174 = vsyncadd [#allocation4], 4294967168 }
  0x39   :  { %90 = vsyncpa [#allocation3], 1 }
  0x3a   :  { %91 = vsyncpa [#allocation6], 1 }
  0x3b   :  { %92 = vsyncpa [#allocation4], 1 }

</bundles_post_ra>
